<compile_context>
chip_gen: v7x
topology: tpu7x:2x2x1
jax: 0.10.0
libtpu: 0.0.40
codegen_flags: <defaults>
</compile_context>

<pallas_src>
import jax
import jax.numpy as jnp
from jax.experimental import pallas as pl
from jax.experimental.pallas import tpu as pltpu


def _round_up(x, m):
    return (x + m - 1) // m * m


def linear_sum_kernel(x0_ref, x1_ref, w0_ref, b0_ref, w1_ref, b1_ref,
                      wout_ref, bout_ref, o_ref):
    # linear0 + relu (bf16 MXU inputs, f32 accumulation, f32 epilogue)
    h0 = jnp.dot(x0_ref[...], w0_ref[...], preferred_element_type=jnp.float32)
    h0 = jnp.maximum(h0 + b0_ref[...], 0.0)
    # linear1 + relu
    h1 = jnp.dot(x1_ref[...], w1_ref[...], preferred_element_type=jnp.float32)
    h1 = jnp.maximum(h1 + b1_ref[...], 0.0)
    # sum; cast only as MXU input for the output projection (f32 VPU math kept)
    z = (h0 + h1).astype(wout_ref.dtype)
    # linear_out + relu
    out = jnp.dot(z, wout_ref[...], preferred_element_type=jnp.float32)
    out = jnp.maximum(out + bout_ref[...], 0.0)
    o_ref[...] = out.astype(o_ref.dtype)


def linear_sum(x0, x1, w0, b0, w1, b1, wout, bout, *,
               tm=256, compute_dtype=jnp.bfloat16,
               vmem_limit_bytes=48 * 1024 * 1024):
    """Fused LinearSum forward.

    x0: [B, d0], x1: [B, d1]
    w0: [d0, M], b0: [1, M]   (weights stored pre-transposed [in, out])
    w1: [d1, M], b1: [1, M]
    wout: [M, O], bout: [1, O]
    returns: [B, O] (same dtype as x0)
    """
    B, d0 = x0.shape
    _, d1 = x1.shape
    M = w0.shape[1]
    O = wout.shape[1]
    out_dtype = x0.dtype

    # Pad every lane / contraction dim to a multiple of 128 (zero padding keeps
    # the math exact), and pad the batch to a multiple of the batch tile.
    d0p, d1p = _round_up(d0, 128), _round_up(d1, 128)
    Mp, Op = _round_up(M, 128), _round_up(O, 128)
    tm_eff = min(tm, _round_up(B, 128))   # multiple of 128 -> bf16 sublane safe
    Bp = _round_up(B, tm_eff)

    def pad2(a, rows, cols, dtype):
        a = a.astype(dtype)
        pr, pc = rows - a.shape[0], cols - a.shape[1]
        if pr or pc:
            a = jnp.pad(a, ((0, pr), (0, pc)))
        return a

    x0p = pad2(x0, Bp, d0p, compute_dtype)
    x1p = pad2(x1, Bp, d1p, compute_dtype)
    w0p = pad2(w0, d0p, Mp, compute_dtype)
    w1p = pad2(w1, d1p, Mp, compute_dtype)
    wop = pad2(wout, Mp, Op, compute_dtype)
    b0p = pad2(b0, 1, Mp, jnp.float32)
    b1p = pad2(b1, 1, Mp, jnp.float32)
    bop = pad2(bout, 1, Op, jnp.float32)

    grid = (Bp // tm_eff,)

    cbytes = jnp.dtype(compute_dtype).itemsize
    obytes = jnp.dtype(out_dtype).itemsize
    flops = 2 * Bp * Mp * (d0p + d1p + Op)
    bytes_accessed = (
        (Bp * d0p + Bp * d1p) * cbytes              # activations in
        + (d0p * Mp + d1p * Mp + Mp * Op) * cbytes  # weights (read once)
        + (2 * Mp + Op) * 4                         # biases (f32)
        + Bp * Op * obytes)                         # output
    cost = pl.CostEstimate(flops=flops, transcendentals=0,
                           bytes_accessed=bytes_accessed)

    out_padded = pl.pallas_call(
        linear_sum_kernel,
        out_shape=jax.ShapeDtypeStruct((Bp, Op), out_dtype),
        grid_spec=pltpu.PrefetchScalarGridSpec(
            num_scalar_prefetch=0,
            grid=grid,
            in_specs=[
                pl.BlockSpec((tm_eff, d0p), lambda i: (i, 0)),  # x0 batch tile
                pl.BlockSpec((tm_eff, d1p), lambda i: (i, 0)),  # x1 batch tile
                pl.BlockSpec((d0p, Mp), lambda i: (0, 0)),      # w0 (resident)
                pl.BlockSpec((1, Mp), lambda i: (0, 0)),        # b0
                pl.BlockSpec((d1p, Mp), lambda i: (0, 0)),      # w1 (resident)
                pl.BlockSpec((1, Mp), lambda i: (0, 0)),        # b1
                pl.BlockSpec((Mp, Op), lambda i: (0, 0)),       # wout (resident)
                pl.BlockSpec((1, Op), lambda i: (0, 0)),        # bout
            ],
            out_specs=pl.BlockSpec((tm_eff, Op), lambda i: (i, 0)),
        ),
        compiler_params=pltpu.CompilerParams(
            dimension_semantics=("parallel",),
            vmem_limit_bytes=vmem_limit_bytes),
        cost_estimate=cost,
    )(x0p, x1p, w0p, b0p, w1p, b1p, wop, bop)

    # Strip batch / output padding (cheap wrapper-side slice).
    return out_padded[:B, :O]


def linear_sum_ref(x0, x1, w0, b0, w1, b1, wout, bout,
                   compute_dtype=jnp.float32):
    cd = compute_dtype
    h0 = jnp.dot(x0.astype(cd), w0.astype(cd),
                 preferred_element_type=jnp.float32) + b0
    h0 = jnp.maximum(h0, 0.0)
    h1 = jnp.dot(x1.astype(cd), w1.astype(cd),
                 preferred_element_type=jnp.float32) + b1
    h1 = jnp.maximum(h1, 0.0)
    z = (h0 + h1).astype(cd)
    out = jnp.dot(z, wout.astype(cd),
                  preferred_element_type=jnp.float32) + bout
    return jnp.maximum(out, 0.0)


if __name__ == "__main__":
    # Small shapes consistent with the module: two input modalities with
    # different feature dims, a shared mm_dim, and an output dim.
    B = 8
    input_dims = (32, 48)
    mm_dim = 128
    output_dim = 64

    key = jax.random.PRNGKey(0)
    k = jax.random.split(key, 8)

    x0 = jax.random.normal(k[0], (B, input_dims[0]), dtype=jnp.float32)
    x1 = jax.random.normal(k[1], (B, input_dims[1]), dtype=jnp.float32)

    # Deterministic parameter init (PyTorch Linear-style uniform bounds),
    # stored pre-transposed as [in, out].
    def init_linear(kw, kb, fan_in, fan_out):
        bound = 1.0 / jnp.sqrt(jnp.float32(fan_in))
        w = jax.random.uniform(kw, (fan_in, fan_out), jnp.float32, -bound, bound)
        b = jax.random.uniform(kb, (1, fan_out), jnp.float32, -bound, bound)
        return w, b

    w0, b0 = init_linear(k[2], k[3], input_dims[0], mm_dim)
    w1, b1 = init_linear(k[4], k[5], input_dims[1], mm_dim)
    wout, bout = init_linear(k[6], k[7], mm_dim, output_dim)

    out = linear_sum(x0, x1, w0, b0, w1, b1, wout, bout)
    out = jax.block_until_ready(out)
    assert out.shape == (B, output_dim)

    # Reference with the kernel's numerics (bf16 MXU inputs, f32 accumulation).
    ref_bf16 = linear_sum_ref(x0, x1, w0, b0, w1, b1, wout, bout,
                              compute_dtype=jnp.bfloat16)
    assert jnp.allclose(out, ref_bf16, atol=1e-2, rtol=1e-2), \
        "mismatch vs bf16-matched reference"

    # Sanity check vs full-f32 module semantics (loose: bf16 quantization).
    ref_f32 = linear_sum_ref(x0, x1, w0, b0, w1, b1, wout, bout,
                             compute_dtype=jnp.float32)
    assert jnp.allclose(out, ref_f32, atol=2e-1, rtol=1e-1), \
        "mismatch vs f32 reference"

    print("KERNEL_OK")
</pallas_src>

<mosaic_0001>
module attributes {stable_mosaic.version = 11 : i64} {
  func.func @linear_sum_kernel(%arg0: i32, %arg1: memref<128x128xbf16, #tpu.memory_space<vmem>>, %arg2: memref<128x128xbf16, #tpu.memory_space<vmem>>, %arg3: memref<128x128xbf16, #tpu.memory_space<vmem>>, %arg4: memref<1x128xf32, #tpu.memory_space<vmem>>, %arg5: memref<128x128xbf16, #tpu.memory_space<vmem>>, %arg6: memref<1x128xf32, #tpu.memory_space<vmem>>, %arg7: memref<128x128xbf16, #tpu.memory_space<vmem>>, %arg8: memref<1x128xf32, #tpu.memory_space<vmem>>, %arg9: memref<128x128xf32, #tpu.memory_space<vmem>>) attributes {dimension_semantics = [#tpu.dimension_semantics<parallel>], iteration_bounds = array<i64: 1>, scalar_prefetch = 0 : i64, scratch_operands = 0 : i64, tpu.core_type = #tpu.core_type<tc>, window_params = [{transform_indices = @transform_0, window_bounds = array<i64: 128, 128>}, {transform_indices = @transform_1, window_bounds = array<i64: 128, 128>}, {pipeline_mode = #tpu.pipeline_mode<synchronous>, transform_indices = @transform_2, window_bounds = array<i64: 128, 128>}, {pipeline_mode = #tpu.pipeline_mode<synchronous>, transform_indices = @transform_3, window_bounds = array<i64: 1, 128>}, {pipeline_mode = #tpu.pipeline_mode<synchronous>, transform_indices = @transform_4, window_bounds = array<i64: 128, 128>}, {pipeline_mode = #tpu.pipeline_mode<synchronous>, transform_indices = @transform_5, window_bounds = array<i64: 1, 128>}, {pipeline_mode = #tpu.pipeline_mode<synchronous>, transform_indices = @transform_6, window_bounds = array<i64: 128, 128>}, {pipeline_mode = #tpu.pipeline_mode<synchronous>, transform_indices = @transform_7, window_bounds = array<i64: 1, 128>}, {transform_indices = @transform_8, window_bounds = array<i64: 128, 128>}]} {
    %c0 = arith.constant 0 : index
    %c0_0 = arith.constant 0 : index
    %0 = vector.load %arg1[%c0, %c0_0] : memref<128x128xbf16, #tpu.memory_space<vmem>>, vector<128x128xbf16>
    %c0_1 = arith.constant 0 : index
    %c0_2 = arith.constant 0 : index
    %1 = vector.load %arg3[%c0_1, %c0_2] : memref<128x128xbf16, #tpu.memory_space<vmem>>, vector<128x128xbf16>
    %cst = arith.constant dense<0.000000e+00> : vector<128x128xf32>
    %2 = tpu.matmul %0, %1, %cst {dimension_numbers = #tpu.dot_dimension_numbers<[1], [0], [0], [1], [0, 0, 1, 1], [], []>} : vector<128x128xbf16>, vector<128x128xbf16>, vector<128x128xf32> -> vector<128x128xf32>
    %c0_3 = arith.constant 0 : index
    %c0_4 = arith.constant 0 : index
    %3 = vector.load %arg4[%c0_3, %c0_4] : memref<1x128xf32, #tpu.memory_space<vmem>>, vector<1x128xf32>
    %4 = vector.broadcast %3 : vector<1x128xf32> to vector<128x128xf32>
    %5 = arith.addf %2, %4 : vector<128x128xf32>
    %cst_5 = arith.constant 0.000000e+00 : f32
    %6 = vector.broadcast %cst_5 : f32 to vector<128x128xf32>
    %7 = arith.maximumf %5, %6 : vector<128x128xf32>
    %c0_6 = arith.constant 0 : index
    %c0_7 = arith.constant 0 : index
    %8 = vector.load %arg2[%c0_6, %c0_7] : memref<128x128xbf16, #tpu.memory_space<vmem>>, vector<128x128xbf16>
    %c0_8 = arith.constant 0 : index
    %c0_9 = arith.constant 0 : index
    %9 = vector.load %arg5[%c0_8, %c0_9] : memref<128x128xbf16, #tpu.memory_space<vmem>>, vector<128x128xbf16>
    %cst_10 = arith.constant dense<0.000000e+00> : vector<128x128xf32>
    %10 = tpu.matmul %8, %9, %cst_10 {dimension_numbers = #tpu.dot_dimension_numbers<[1], [0], [0], [1], [0, 0, 1, 1], [], []>} : vector<128x128xbf16>, vector<128x128xbf16>, vector<128x128xf32> -> vector<128x128xf32>
    %c0_11 = arith.constant 0 : index
    %c0_12 = arith.constant 0 : index
    %11 = vector.load %arg6[%c0_11, %c0_12] : memref<1x128xf32, #tpu.memory_space<vmem>>, vector<1x128xf32>
    %12 = vector.broadcast %11 : vector<1x128xf32> to vector<128x128xf32>
    %13 = arith.addf %10, %12 : vector<128x128xf32>
    %cst_13 = arith.constant 0.000000e+00 : f32
    %14 = vector.broadcast %cst_13 : f32 to vector<128x128xf32>
    %15 = arith.maximumf %13, %14 : vector<128x128xf32>
    %16 = arith.addf %7, %15 : vector<128x128xf32>
    %17 = arith.truncf %16 : vector<128x128xf32> to vector<128x128xbf16>
    %c0_14 = arith.constant 0 : index
    %c0_15 = arith.constant 0 : index
    %18 = vector.load %arg7[%c0_14, %c0_15] : memref<128x128xbf16, #tpu.memory_space<vmem>>, vector<128x128xbf16>
    %cst_16 = arith.constant dense<0.000000e+00> : vector<128x128xf32>
    %19 = tpu.matmul %17, %18, %cst_16 {dimension_numbers = #tpu.dot_dimension_numbers<[1], [0], [0], [1], [0, 0, 1, 1], [], []>} : vector<128x128xbf16>, vector<128x128xbf16>, vector<128x128xf32> -> vector<128x128xf32>
    %c0_17 = arith.constant 0 : index
    %c0_18 = arith.constant 0 : index
    %20 = vector.load %arg8[%c0_17, %c0_18] : memref<1x128xf32, #tpu.memory_space<vmem>>, vector<1x128xf32>
    %21 = vector.broadcast %20 : vector<1x128xf32> to vector<128x128xf32>
    %22 = arith.addf %19, %21 : vector<128x128xf32>
    %cst_19 = arith.constant 0.000000e+00 : f32
    %23 = vector.broadcast %cst_19 : f32 to vector<128x128xf32>
    %24 = arith.maximumf %22, %23 : vector<128x128xf32>
    %c0_20 = arith.constant 0 : index
    %c0_21 = arith.constant 0 : index
    %25 = vector.load %arg9[%c0_20, %c0_21] : memref<128x128xf32, #tpu.memory_space<vmem>>, vector<128x128xf32>
    tpu.vector_store %arg9[%c0_20, %c0_21], %24 {strides = array<i32>} : memref<128x128xf32, #tpu.memory_space<vmem>>, vector<128x128xf32>,
    return
  }
  func.func @transform_0(%arg0: i32) -> (i32, i32) {
    %c0_i32 = arith.constant 0 : i32
    %c0_i32_0 = arith.constant 0 : i32
    return %arg0, %c0_i32 : i32, i32
  }
  func.func @transform_1(%arg0: i32) -> (i32, i32) {
    %c0_i32 = arith.constant 0 : i32
    %c0_i32_0 = arith.constant 0 : i32
    return %arg0, %c0_i32 : i32, i32
  }
  func.func @transform_2(%arg0: i32) -> (i32, i32) {
    %c0_i32 = arith.constant 0 : i32
    %c0_i32_0 = arith.constant 0 : i32
    %c0_i32_1 = arith.constant 0 : i32
    return %c0_i32, %c0_i32_0 : i32, i32
  }
  func.func @transform_3(%arg0: i32) -> (i32, i32) {
    %c0_i32 = arith.constant 0 : i32
    %c0_i32_0 = arith.constant 0 : i32
    %c0_i32_1 = arith.constant 0 : i32
    return %c0_i32, %c0_i32_0 : i32, i32
  }
  func.func @transform_4(%arg0: i32) -> (i32, i32) {
    %c0_i32 = arith.constant 0 : i32
    %c0_i32_0 = arith.constant 0 : i32
    %c0_i32_1 = arith.constant 0 : i32
    return %c0_i32, %c0_i32_0 : i32, i32
  }
  func.func @transform_5(%arg0: i32) -> (i32, i32) {
    %c0_i32 = arith.constant 0 : i32
    %c0_i32_0 = arith.constant 0 : i32
    %c0_i32_1 = arith.constant 0 : i32
    return %c0_i32, %c0_i32_0 : i32, i32
  }
  func.func @transform_6(%arg0: i32) -> (i32, i32) {
    %c0_i32 = arith.constant 0 : i32
    %c0_i32_0 = arith.constant 0 : i32
    %c0_i32_1 = arith.constant 0 : i32
    return %c0_i32, %c0_i32_0 : i32, i32
  }
  func.func @transform_7(%arg0: i32) -> (i32, i32) {
    %c0_i32 = arith.constant 0 : i32
    %c0_i32_0 = arith.constant 0 : i32
    %c0_i32_1 = arith.constant 0 : i32
    return %c0_i32, %c0_i32_0 : i32, i32
  }
  func.func @transform_8(%arg0: i32) -> (i32, i32) {
    %c0_i32 = arith.constant 0 : i32
    %c0_i32_0 = arith.constant 0 : i32
    return %arg0, %c0_i32 : i32, i32
  }
}

</mosaic_0001>

<bundles_post_ra>
// kernel: tpu_custom_call.1
= control target key start
LH: loop header
LB: loop body
LE: loop exit
PB: predicated region body
PF: predicated region fallthrough
CT: control target
= control target key end

     0   :  { %13 = vsyncpa [#allocation3], 0  ;;  %s1432_s0 = inlined_call_operand.hbm [shape: bf16[128,128], index: 0, kind: input, shape index: {}]   ;;  %s1433_s1 = inlined_call_operand.hbm [shape: bf16[128,128], index: 1, kind: input, shape index: {}]   ;;  %s1434_s2 = inlined_call_operand.hbm [shape: bf16[128,128], index: 2, kind: input, shape index: {}]   ;;  %s1435_s3 = inlined_call_operand.vmem [shape: f32[1,128], index: 3, kind: input, shape index: {}]   ;;  %s1436_s4 = inlined_call_operand.hbm [shape: bf16[128,128], index: 4, kind: input, shape index: {}]   ;;  %s1437_s5 = inlined_call_operand.vmem [shape: f32[1,128], index: 5, kind: input, shape index: {}]   ;;  %s1438_s6 = inlined_call_operand.hbm [shape: bf16[128,128], index: 6, kind: input, shape index: {}]   ;;  %s1439_s7 = inlined_call_operand.vmem [shape: f32[1,128], index: 7, kind: input, shape index: {}]   ;;  %s1440_s8 = inlined_call_operand.hbm [shape: f32[128,128], index: 8, kind: output, shape index: {}]  }
   0x1   :  { %14 = vsyncpa [#allocation6], 0 }
   0x2   :  { %15 = vsyncpa [#allocation9], 0 }
   0x3   :  { %16 = vsyncpa [#allocation4], 0  ;;  %s1231_s27 = smov [#allocation5]   ;;  %s1232_s29 = smov [#allocation8]  }
   0x4   :  { %s34_s28 = sshll.u32 %s1231_s27, 4  ;;  %s60_s30 = sshll.u32 %s1232_s29, 4  ;;  %s35_s28 = int_to_ptr.vmem [resolvable:$true] %s34_s28  ;;  %s1286_s30 = int_to_ptr.vmem [resolvable:$true] %s60_s30 }
   0x5   :  { %s1091_s11 = scalar_lea.hbm %s1433_s1, 1024 }
   0x6   :  { %p1092_p0 = scmp.ne.s32.totalorder %s1433_s1, %s1091_s11  ;;  %p1095_p1 = scmp.lt.u32.totalorder %s1091_s11, %s1433_s1 }
   0x8   :  { %p1097_p2 = pnand %p1095_p1, %p1092_p0 }
   0xa   :  { %1100 = shalt.err (!%p1097_p2)
}
   0xb   :  { %s1101_s16 = scalar_lea.vmem %s35_s28, 1024  ;;  %p1106_p4 = scmp.lt.s32.totalorder %s35_s28, %s35_s28 }
   0xc   :  { %p1102_p3 = scmp.ne.s32.totalorder %s35_s28, %s1101_s16  ;;  %p1107_p5 = scmp.lt.s32.totalorder %s1101_s16, %s1101_s16 }
   0xe   :  { %p1108_p6 = por %p1107_p5, %p1106_p4 }
  0x10   :  { %p1109_p7 = pnand %p1108_p6, %p1102_p3 }
  0x12   :  { %1112 = shalt.err (!%p1109_p7)
}
  0x13   :  { %s1233_s17 = smov 64   ;;  %s1234_s18 = smov 4  }
  0x14   :  { %40 = dma.hbm_to_vmem [thread:$0]  %s1433_s1, 1024, %s35_s28, [#allocation6], %s1233_s17, %s1233_s17, %s1234_s18  }
  0x15   :  { %s1113_s23 = scalar_lea.hbm %s1436_s4, 1024 }
  0x16   :  { %p1114_p8 = scmp.ne.s32.totalorder %s1436_s4, %s1113_s23  ;;  %p1117_p9 = scmp.lt.u32.totalorder %s1113_s23, %s1436_s4 }
  0x18   :  { %p1119_p10 = pnand %p1117_p9, %p1114_p8 }
  0x1a   :  { %1122 = shalt.err (!%p1119_p10)
}
  0x1b   :  { %s1123_s29 = scalar_lea.vmem %s1286_s30, 1024  ;;  %p1128_p12 = scmp.lt.s32.totalorder %s1286_s30, %s1286_s30 }
  0x1c   :  { %p1124_p11 = scmp.ne.s32.totalorder %s1286_s30, %s1123_s29  ;;  %p1129_p13 = scmp.lt.s32.totalorder %s1123_s29, %s1123_s29 }
  0x1e   :  { %p1130_p0 = por %p1129_p13, %p1128_p12 }
  0x20   :  { %p1131_p1 = pnand %p1130_p0, %p1124_p11 }
  0x22   :  { %1134 = shalt.err (!%p1131_p1)
}
  0x23   :  { %66 = dma.hbm_to_vmem [thread:$0]  %s1436_s4, 1024, %s1286_s30, [#allocation9], %s1233_s17, %s1233_s17, %s1234_s18  }
  0x24   :  { %s1235_s9 = smov [#allocation2]   ;;  %s1236_s11 = smov [#allocation7]  }
  0x25   :  { %s22_s10 = sshll.u32 %s1235_s9, 4  ;;  %s46_s12 = sshll.u32 %s1236_s11, 4  ;;  %s23_s10 = int_to_ptr.vmem [resolvable:$true] %s22_s10  ;;  %s1323_s12 = int_to_ptr.vmem [resolvable:$true] %s46_s12 }
  0x26   :  { %s1135_s15 = scalar_lea.hbm %s1432_s0, 1024 }
  0x27   :  { %p1136_p2 = scmp.ne.s32.totalorder %s1432_s0, %s1135_s15  ;;  %p1139_p3 = scmp.lt.u32.totalorder %s1135_s15, %s1432_s0 }
  0x29   :  { %p1141_p4 = pnand %p1139_p3, %p1136_p2 }
  0x2b   :  { %1144 = shalt.err (!%p1141_p4)
}
  0x2c   :  { %s1145_s4 = scalar_lea.vmem %s23_s10, 1024  ;;  %p1150_p6 = scmp.lt.s32.totalorder %s23_s10, %s23_s10 }
  0x2d   :  { %p1146_p5 = scmp.ne.s32.totalorder %s23_s10, %s1145_s4  ;;  %p1151_p7 = scmp.lt.s32.totalorder %s1145_s4, %s1145_s4 }
  0x2f   :  { %p1152_p8 = por %p1151_p7, %p1150_p6 }
  0x31   :  { %p1153_p9 = pnand %p1152_p8, %p1146_p5 }
  0x33   :  { %1156 = shalt.err (!%p1153_p9)
}
  0x34   :  { %28 = dma.hbm_to_vmem [thread:$0]  %s1432_s0, 1024, %s23_s10, [#allocation3], %s1233_s17, %s1233_s17, %s1234_s18  }
  0x35   :  { %s1157_s25 = scalar_lea.hbm %s1434_s2, 1024 }
  0x36   :  { %p1158_p10 = scmp.ne.s32.totalorder %s1434_s2, %s1157_s25  ;;  %p1161_p11 = scmp.lt.u32.totalorder %s1157_s25, %s1434_s2 }
  0x38   :  { %p1163_p12 = pnand %p1161_p11, %p1158_p10 }
  0x3a   :  { %1166 = shalt.err (!%p1163_p12)
}
  0x3b   :  { %s1167_s28 = scalar_lea.vmem %s1323_s12, 1024  ;;  %p1172_p0 = scmp.lt.s32.totalorder %s1323_s12, %s1323_s12 }
  0x3c   :  { %p1168_p13 = scmp.ne.s32.totalorder %s1323_s12, %s1167_s28  ;;  %p1173_p1 = scmp.lt.s32.totalorder %s1167_s28, %s1167_s28 }
  0x3e   :  { %p1174_p2 = por %p1173_p1, %p1172_p0 }
  0x40   :  { %p1175_p3 = pnand %p1174_p2, %p1168_p13 }
  0x42   :  { %1178 = shalt.err (!%p1175_p3)
}
  0x43   :  { %52 = dma.hbm_to_vmem [thread:$0]  %s1434_s2, 1024, %s1323_s12, [#allocation6], %s1233_s17, %s1233_s17, %s1234_s18  }
  0x44   :  { %s1237_s10 = smov [#allocation10]   ;;  %s1179_s15 = scalar_lea.hbm %s1438_s6, 1024 }
  0x45   :  { %s74_s11 = sshll.u32 %s1237_s10, 4  ;;  %p1180_p4 = scmp.ne.s32.totalorder %s1438_s6, %s1179_s15  ;;  %s75_s11 = int_to_ptr.vmem [resolvable:$true] %s74_s11 }
  0x46   :  { %p1183_p5 = scmp.lt.u32.totalorder %s1179_s15, %s1438_s6 }
  0x48   :  { %p1185_p6 = pnand %p1183_p5, %p1180_p4 }
  0x4a   :  { %1188 = shalt.err (!%p1185_p6)
}
  0x4b   :  { %s1189_s4 = scalar_lea.vmem %s75_s11, 1024  ;;  %p1194_p8 = scmp.lt.s32.totalorder %s75_s11, %s75_s11 }
  0x4c   :  { %p1190_p7 = scmp.ne.s32.totalorder %s75_s11, %s1189_s4  ;;  %p1195_p9 = scmp.lt.s32.totalorder %s1189_s4, %s1189_s4 }
  0x4e   :  { %p1196_p10 = por %p1195_p9, %p1194_p8 }
  0x50   :  { %p1197_p11 = pnand %p1196_p10, %p1190_p7 }
  0x52   :  { %1200 = shalt.err (!%p1197_p11)
}
  0x53   :  { %80 = dma.hbm_to_vmem [thread:$0]  %s1438_s6, 1024, %s75_s11, [#allocation9], %s1233_s17, %s1233_s17, %s1234_s18  }
  0x54   :  { %1223 = dma.done.wait [#allocation3], 1024  }
  0x55   :  { %1224 = vsyncadd [#allocation3], 4294966272 }
  0x56   :  { %1225 = dma.done.wait [#allocation6], 2048  }
  0x57   :  { %1226 = vsyncadd [#allocation6], 4294965248 }
  0x58   :  { %1227 = dma.done.wait [#allocation9], 2048  }
  0x59   :  { %1228 = vsyncadd [#allocation9], 4294965248  ;;  %v1051_v0 = vld [vmem:[#allocation7] sm:$0xff]   ;;  %v1053_v2 = vld [vmem:[#allocation7 + $0x8] sm:$0xff]  }
  0x5a   :  { %v1052_v1 = vld [vmem:[#allocation8] sm:$0xff]   ;;  %929 = vmatprep.subr.bf16.mxu0 %v1051_v0  ;;  %v1054_v3 = vld [vmem:[#allocation8 + $0x8] sm:$0xff]   ;;  %v1055_v4 = vld [vmem:[#allocation7 + $0x10] sm:$0xff]  }
  0x5b   :  { %961 = vmatprep.subr.bf16.mxu1 %v1052_v1  ;;  %930 = vmatpush3.bf16.msra.mxu0 %v1051_v0  ;;  %v1056_v5 = vld [vmem:[#allocation8 + $0x10] sm:$0xff]   ;;  %v1057_v6 = vld [vmem:[#allocation7 + $0x18] sm:$0xff]   ;;  %v1059_v8 = vld [vmem:[#allocation7 + $0x20] sm:$0xff]  }
  0x5c   :  { %962 = vmatpush3.bf16.msra.mxu1 %v1052_v1  ;;  %931 = vmatprep.subr.bf16.mxu0 %v1053_v2  ;;  %v1058_v7 = vld [vmem:[#allocation8 + $0x18] sm:$0xff]   ;;  %v1060_v9 = vld [vmem:[#allocation8 + $0x20] sm:$0xff]   ;;  %v1061_v10 = vld [vmem:[#allocation7 + $0x28] sm:$0xff]  }
  0x5d   :  { %963 = vmatprep.subr.bf16.mxu1 %v1054_v3  ;;  %v1062_v11 = vld [vmem:[#allocation8 + $0x28] sm:$0xff]   ;;  %v1067_v12 = vld [vmem:[#allocation2] sm:$0xff]   ;;  %v1063_v14 = vld [vmem:[#allocation7 + $0x30] sm:$0xff]  }
  0x5e   :  { %v1068_v13 = vld [vmem:[#allocation5] sm:$0xff]   ;;  %945 = vmatprep.mubr.bf16.mxu0 %v1067_v12  ;;  %v1064_v15 = vld [vmem:[#allocation8 + $0x30] sm:$0xff]   ;;  %v1065_v16 = vld [vmem:[#allocation7 + $0x38] sm:$0xff]  }
  0x5f   :  { %932 = vmatpush3.bf16.msra.mxu0 %v1053_v2  ;;  %977 = vmatprep.mubr.bf16.mxu1 %v1068_v13  ;;  %v1066_v17 = vld [vmem:[#allocation8 + $0x38] sm:$0xff]   ;;  %v1069_v18 = vld [vmem:[#allocation2 + $0x8] sm:$0xff]   ;;  %v1071_v20 = vld [vmem:[#allocation2 + $0x10] sm:$0xff]  }
  0x60   :  { %964 = vmatpush3.bf16.msra.mxu1 %v1054_v3  ;;  %933 = vmatprep.subr.bf16.mxu0 %v1055_v4  ;;  %v1070_v19 = vld [vmem:[#allocation5 + $0x8] sm:$0xff]   ;;  %v1072_v21 = vld [vmem:[#allocation5 + $0x10] sm:$0xff]   ;;  %v1083_v22 = vld [vmem:[#allocation10] sm:$0xff]  }
  0x61   :  { %965 = vmatprep.subr.bf16.mxu1 %v1056_v5  ;;  %v1084_v23 = vld [vmem:[#allocation10 + $0x8] sm:$0xff]   ;;  %v1073_v24 = vld [vmem:[#allocation2 + $0x18] sm:$0xff]   ;;  %v1085_v25 = vld [vmem:[#allocation10 + $0x10] sm:$0xff]  }
  0x62   :  { %v1074_v26 = vld [vmem:[#allocation5 + $0x18] sm:$0xff]   ;;  %v1075_v27 = vld [vmem:[#allocation2 + $0x20] sm:$0xff]   ;;  %v1077_v31 = vld [vmem:[#allocation2 + $0x28] sm:$0xff]  }
  0x63   :  { %934 = vmatpush3.bf16.msra.mxu0 %v1055_v4  ;;  %v1076_v28 = vld [vmem:[#allocation5 + $0x20] sm:$0xff]   ;;  %v1086_v29 = vld [vmem:[#allocation10 + $0x18] sm:$0xff]   ;;  %v1078_v32 = vld [vmem:[#allocation5 + $0x28] sm:$0xff]  }
  0x64   :  { %966 = vmatpush3.bf16.msra.mxu1 %v1056_v5  ;;  %935 = vmatprep.subr.bf16.mxu0 %v1057_v6  ;;  %v1087_v30 = vld [vmem:[#allocation10 + $0x20] sm:$0xff]   ;;  %v1079_v33 = vld [vmem:[#allocation2 + $0x30] sm:$0xff]   ;;  %v1081_v35 = vld [vmem:[#allocation2 + $0x38] sm:$0xff]  }
  0x65   :  { %967 = vmatprep.subr.bf16.mxu1 %v1058_v7  ;;  %v1080_v34 = vld [vmem:[#allocation5 + $0x30] sm:$0xff]   ;;  %v1082_v36 = vld [vmem:[#allocation5 + $0x38] sm:$0xff]   ;;  %v1088_v37 = vld [vmem:[#allocation10 + $0x28] sm:$0xff]  }
  0x66   :  { %v1089_v38 = vld [vmem:[#allocation10 + $0x30] sm:$0xff]   ;;  %v1090_v39 = vld [vmem:[#allocation10 + $0x38] sm:$0xff]   ;;  %v1378_v40 = vld [vmem:[%s1435_s3] ss:$0 sm:$0xff] }
  0x67   :  { %936 = vmatpush3.bf16.msra.mxu0 %v1057_v6  ;;  %v1383_v41 = vld [vmem:[%s1437_s5] ss:$0 sm:$0xff] }
  0x68   :  { %968 = vmatpush3.bf16.msra.mxu1 %v1058_v7  ;;  %937 = vmatprep.subr.bf16.mxu0 %v1059_v8 }
  0x69   :  { %969 = vmatprep.subr.bf16.mxu1 %v1060_v9 }
  0x6b   :  { %938 = vmatpush3.bf16.msra.mxu0 %v1059_v8 }
  0x6c   :  { %970 = vmatpush3.bf16.msra.mxu1 %v1060_v9  ;;  %939 = vmatprep.subr.bf16.mxu0 %v1061_v10 }
  0x6d   :  { %971 = vmatprep.subr.bf16.mxu1 %v1062_v11 }
  0x6f   :  { %940 = vmatpush3.bf16.msra.mxu0 %v1061_v10 }
  0x70   :  { %972 = vmatpush3.bf16.msra.mxu1 %v1062_v11  ;;  %941 = vmatprep.subr.bf16.mxu0 %v1063_v14 }
  0x71   :  { %973 = vmatprep.subr.bf16.mxu1 %v1064_v15 }
  0x73   :  { %942 = vmatpush3.bf16.msra.mxu0 %v1063_v14 }
  0x74   :  { %974 = vmatpush3.bf16.msra.mxu1 %v1064_v15  ;;  %943 = vmatprep.subr.bf16.mxu0 %v1065_v16 }
  0x75   :  { %975 = vmatprep.subr.bf16.mxu1 %v1066_v17 }
  0x77   :  { %944 = vmatpush3.bf16.msra.mxu0 %v1065_v16 }
  0x78   :  { %976 = vmatpush3.bf16.msra.mxu1 %v1066_v17  ;;  %993 = vmatprep.subr.bf16.mxu0 %v1083_v22 }
  0x79   :  { %1025 = vmatprep.subr.bf16.mxu1 %v1083_v22 }
  0x7a   :  { %946 = vmatmul.mubr.bf16.vlgmr.msra.gmra.mrb[0].mxu0 %v1069_v18 }
  0x7b   :  { %978 = vmatmul.mubr.bf16.vlgmr.msra.gmra.mrb[0].mxu1 %v1070_v19  ;;  %949 = vmatprep.mubr.bf16.mxu0 %v1071_v20 }
  0x7c   :  { %981 = vmatprep.mubr.bf16.mxu1 %v1072_v21  ;;  %994 = vmatpush3.bf16.msra.mxu0 %v1083_v22 }
  0x7d   :  { %995 = vmatprep.subr.bf16.mxu0 %v1084_v23  ;;  %1033 = vmatpush3.bf16.msra.mxu1 %v1083_v22 }
  0x7e   :  { %1026 = vmatprep.subr.bf16.mxu1 %v1084_v23 }
  0x80   :  { %996 = vmatpush3.bf16.msra.mxu0 %v1084_v23 }
  0x81   :  { %997 = vmatprep.subr.bf16.mxu0 %v1085_v25  ;;  %1034 = vmatpush3.bf16.msra.mxu1 %v1084_v23 }
  0x82   :  { %950 = vmatmul.mubr.bf16.gmra.mrb[4].mxu0 %v1073_v24  ;;  %1027 = vmatprep.subr.bf16.mxu1 %v1085_v25 }
  0x83   :  { %982 = vmatmul.mubr.bf16.gmra.mrb[4].mxu1 %v1074_v26  ;;  %953 = vmatprep.mubr.bf16.mxu0 %v1075_v27 }
  0x84   :  { %985 = vmatprep.mubr.bf16.mxu1 %v1076_v28  ;;  %998 = vmatpush3.bf16.msra.mxu0 %v1085_v25 }
  0x85   :  { %999 = vmatprep.subr.bf16.mxu0 %v1086_v29  ;;  %1035 = vmatpush3.bf16.msra.mxu1 %v1085_v25 }
  0x86   :  { %1028 = vmatprep.subr.bf16.mxu1 %v1086_v29 }
  0x88   :  { %1000 = vmatpush3.bf16.msra.mxu0 %v1086_v29 }
  0x89   :  { %1001 = vmatprep.subr.bf16.mxu0 %v1087_v30  ;;  %1036 = vmatpush3.bf16.msra.mxu1 %v1086_v29 }
  0x8a   :  { %954 = vmatmul.mubr.bf16.gmra.mrb[8].mxu0 %v1077_v31  ;;  %1029 = vmatprep.subr.bf16.mxu1 %v1087_v30 }
  0x8b   :  { %986 = vmatmul.mubr.bf16.gmra.mrb[8].mxu1 %v1078_v32  ;;  %957 = vmatprep.mubr.bf16.mxu0 %v1079_v33 }
  0x8c   :  { %989 = vmatprep.mubr.bf16.mxu1 %v1080_v34  ;;  %1002 = vmatpush3.bf16.msra.mxu0 %v1087_v30 }
  0x8d   :  { %1037 = vmatpush3.bf16.msra.mxu1 %v1087_v30  ;;  %1003 = vmatprep.subr.bf16.mxu0 %v1088_v37 }
  0x8e   :  { %1030 = vmatprep.subr.bf16.mxu1 %v1088_v37 }
  0x90   :  { %1004 = vmatpush3.bf16.msra.mxu0 %v1088_v37 }
  0x91   :  { %1038 = vmatpush3.bf16.msra.mxu1 %v1088_v37  ;;  %1005 = vmatprep.subr.bf16.mxu0 %v1089_v38 }
  0x92   :  { %958 = vmatmul.mubr.bf16.gmra.mrb[12].mxu0 %v1081_v35  ;;  %1031 = vmatprep.subr.bf16.mxu1 %v1089_v38 }
  0x93   :  { %990 = vmatmul.mubr.bf16.gmra.mrb[12].mxu1 %v1082_v36 }
  0x94   :  { %1006 = vmatpush3.bf16.msra.mxu0 %v1089_v38 }
  0x95   :  { %1039 = vmatpush3.bf16.msra.mxu1 %v1089_v38  ;;  %1007 = vmatprep.subr.bf16.mxu0 %v1090_v39 }
  0x96   :  { %1032 = vmatprep.subr.bf16.mxu1 %v1090_v39 }
  0x98   :  { %1008 = vmatpush3.bf16.msra.mxu0 %v1090_v39 }
  0x99   :  { %1040 = vmatpush3.bf16.msra.mxu1 %v1090_v39 }
 0x14d   :  { %v947_v42 = vpop.f32.mrb[0].mxu0 }
 0x14e   :  { %v277_v43 = vadd.f32 %v947_v42, %v1378_v40  ;;  %v979_v44 = vpop.f32.mrb[0].mxu1  ;;  %v268_v45 = vpop.f32.mrb[1].mxu0 }
 0x14f   :  { %v525_v46 = vadd.f32 %v979_v44, %v1383_v41  ;;  %v269_v47 = vadd.f32 %v1378_v40, %v268_v45  ;;  %v516_v48 = vpop.f32.mrb[1].mxu1  ;;  %v948_v49 = vpop.f32.mrb[2].mxu0 }
 0x150   :  { %v333_v50 = vmax.f32 %v277_v43, 0.0  ;;  %v517_v51 = vadd.f32 %v1383_v41, %v516_v48  ;;  %v280_v52 = vadd.f32 %v948_v49, %v1378_v40  ;;  %v980_v53 = vpop.f32.mrb[2].mxu1  ;;  %v271_v54 = vpop.f32.mrb[3].mxu0 }
 0x151   :  { %v581_v55 = vmax.f32 %v525_v46, 0.0  ;;  %v331_v56 = vmax.f32 %v269_v47, 0.0  ;;  %v528_v57 = vadd.f32 %v980_v53, %v1383_v41  ;;  %v272_v58 = vadd.f32 %v1378_v40, %v271_v54  ;;  %v519_v59 = vpop.f32.mrb[3].mxu1 }
 0x152   :  { %v579_v60 = vmax.f32 %v517_v51, 0.0  ;;  %v334_v61 = vmax.f32 %v280_v52, 0.0  ;;  %v520_v62 = vadd.f32 %v1383_v41, %v519_v59 }
 0x153   :  { %v597_v63 = vadd.f32 %v581_v55, %v333_v50  ;;  %v582_v0 = vmax.f32 %v528_v57, 0.0  ;;  %v332_v1 = vmax.f32 %v272_v58, 0.0 }
 0x154   :  { %v595_v2 = vadd.f32 %v579_v60, %v331_v56  ;;  %v580_v3 = vmax.f32 %v520_v62, 0.0 }
 0x155   :  { %v598_v4 = vadd.f32 %v582_v0, %v334_v61  ;;  %v951_v5 = vpop.f32.mrb[4].mxu0 }
 0x156   :  { %v596_v6 = vadd.f32 %v580_v3, %v332_v1  ;;  %v293_v7 = vadd.f32 %v951_v5, %v1378_v40  ;;  %v983_v8 = vpop.f32.mrb[4].mxu1  ;;  %v284_v9 = vpop.f32.mrb[5].mxu0 }
 0x157   :  { %v612_v10 = vpack.c.bf16 %v598_v4, %v597_v63  ;;  %v541_v11 = vadd.f32 %v983_v8, %v1383_v41  ;;  %v285_v12 = vadd.f32 %v1378_v40, %v284_v9  ;;  %v532_v13 = vpop.f32.mrb[5].mxu1  ;;  %v952_v14 = vpop.f32.mrb[6].mxu0 }
 0x158   :  { %v337_v15 = vmax.f32 %v293_v7, 0.0  ;;  %v533_v16 = vadd.f32 %v1383_v41, %v532_v13  ;;  %v296_v17 = vadd.f32 %v952_v14, %v1378_v40  ;;  %v984_v18 = vpop.f32.mrb[6].mxu1  ;;  %v287_v19 = vpop.f32.mrb[7].mxu0  ;;  %v611_v20 = vpack.c.bf16 %v596_v6, %v595_v2 }
 0x159   :  { %v585_v21 = vmax.f32 %v541_v11, 0.0  ;;  %v335_v22 = vmax.f32 %v285_v12, 0.0  ;;  %v544_v23 = vadd.f32 %v984_v18, %v1383_v41  ;;  %v288_v24 = vadd.f32 %v1378_v40, %v287_v19  ;;  %v535_v25 = vpop.f32.mrb[7].mxu1 }
 0x15a   :  { %v583_v26 = vmax.f32 %v533_v16, 0.0  ;;  %v338_v27 = vmax.f32 %v296_v17, 0.0  ;;  %v536_v28 = vadd.f32 %v1383_v41, %v535_v25  ;;  %1009 = vmatprep.mubr.bf16.mxu0 %v611_v20 }
 0x15b   :  { %v601_v29 = vadd.f32 %v585_v21, %v337_v15  ;;  %v586_v30 = vmax.f32 %v544_v23, 0.0  ;;  %v336_v31 = vmax.f32 %v288_v24, 0.0  ;;  %1010 = vmatmul.mubr.bf16.vlgmr.msra.gmra.mrb[16].mxu0 %v612_v10 }
 0x15c   :  { %v599_v32 = vadd.f32 %v583_v26, %v335_v22  ;;  %v584_v33 = vmax.f32 %v536_v28, 0.0 }
 0x15d   :  { %v602_v34 = vadd.f32 %v586_v30, %v338_v27  ;;  %v955_v35 = vpop.f32.mrb[8].mxu0 }
 0x15e   :  { %v600_v36 = vadd.f32 %v584_v33, %v336_v31  ;;  %v309_v37 = vadd.f32 %v955_v35, %v1378_v40  ;;  %v987_v38 = vpop.f32.mrb[8].mxu1  ;;  %v300_v39 = vpop.f32.mrb[9].mxu0 }
 0x15f   :  { %v557_v42 = vadd.f32 %v987_v38, %v1383_v41  ;;  %v301_v43 = vadd.f32 %v1378_v40, %v300_v39  ;;  %v548_v44 = vpop.f32.mrb[9].mxu1  ;;  %v956_v45 = vpop.f32.mrb[10].mxu0  ;;  %v614_v46 = vpack.c.bf16 %v602_v34, %v601_v29 }
 0x160   :  { %v341_v47 = vmax.f32 %v309_v37, 0.0  ;;  %v549_v48 = vadd.f32 %v1383_v41, %v548_v44  ;;  %v312_v49 = vadd.f32 %v956_v45, %v1378_v40  ;;  %v988_v50 = vpop.f32.mrb[10].mxu1  ;;  %v303_v51 = vpop.f32.mrb[11].mxu0  ;;  %v613_v52 = vpack.c.bf16 %v600_v36, %v599_v32 }
 0x161   :  { %v589_v53 = vmax.f32 %v557_v42, 0.0  ;;  %v339_v54 = vmax.f32 %v301_v43, 0.0  ;;  %v560_v55 = vadd.f32 %v988_v50, %v1383_v41  ;;  %v304_v56 = vadd.f32 %v1378_v40, %v303_v51  ;;  %v551_v57 = vpop.f32.mrb[11].mxu1 }
 0x162   :  { %v587_v58 = vmax.f32 %v549_v48, 0.0  ;;  %v342_v59 = vmax.f32 %v312_v49, 0.0  ;;  %v552_v60 = vadd.f32 %v1383_v41, %v551_v57  ;;  %1013 = vmatprep.mubr.bf16.mxu0 %v613_v52 }
 0x163   :  { %v605_v61 = vadd.f32 %v589_v53, %v341_v47  ;;  %v590_v62 = vmax.f32 %v560_v55, 0.0  ;;  %v340_v63 = vmax.f32 %v304_v56, 0.0  ;;  %1014 = vmatmul.mubr.bf16.gmra.mrb[20].mxu0 %v614_v46 }
 0x164   :  { %v603_v0 = vadd.f32 %v587_v58, %v339_v54  ;;  %v588_v1 = vmax.f32 %v552_v60, 0.0 }
 0x165   :  { %v606_v2 = vadd.f32 %v590_v62, %v342_v59  ;;  %v959_v3 = vpop.f32.mrb[12].mxu0 }
 0x166   :  { %v604_v4 = vadd.f32 %v588_v1, %v340_v63  ;;  %v325_v5 = vadd.f32 %v959_v3, %v1378_v40  ;;  %v991_v6 = vpop.f32.mrb[12].mxu1  ;;  %v316_v7 = vpop.f32.mrb[13].mxu0 }
 0x167   :  { %v616_v8 = vpack.c.bf16 %v606_v2, %v605_v61  ;;  %v573_v9 = vadd.f32 %v991_v6, %v1383_v41  ;;  %v317_v10 = vadd.f32 %v1378_v40, %v316_v7  ;;  %v564_v11 = vpop.f32.mrb[13].mxu1  ;;  %v960_v12 = vpop.f32.mrb[14].mxu0 }
 0x168   :  { %v345_v13 = vmax.f32 %v325_v5, 0.0  ;;  %v565_v14 = vadd.f32 %v1383_v41, %v564_v11  ;;  %v328_v15 = vadd.f32 %v960_v12, %v1378_v40  ;;  %v992_v16 = vpop.f32.mrb[14].mxu1  ;;  %v319_v17 = vpop.f32.mrb[15].mxu0  ;;  %v615_v18 = vpack.c.bf16 %v604_v4, %v603_v0 }
 0x169   :  { %v593_v19 = vmax.f32 %v573_v9, 0.0  ;;  %v343_v20 = vmax.f32 %v317_v10, 0.0  ;;  %v576_v21 = vadd.f32 %v992_v16, %v1383_v41  ;;  %v320_v22 = vadd.f32 %v1378_v40, %v319_v17  ;;  %v567_v23 = vpop.f32.mrb[15].mxu1  ;;  %v872_v40 = vld [vmem:[%s1439_s7] ss:$0 sm:$0xff]  ;;  %s1238_s7 = smov [#allocation11]  }
 0x16a   :  { %v591_v24 = vmax.f32 %v565_v14, 0.0  ;;  %v346_v25 = vmax.f32 %v328_v15, 0.0  ;;  %v568_v26 = vadd.f32 %v1383_v41, %v567_v23  ;;  %1017 = vmatprep.mubr.bf16.mxu1 %v615_v18  ;;  %s824_s22 = sshll.u32 %s1238_s7, 4  ;;  %s825_s22 = int_to_ptr.vmem [resolvable:$true] %s824_s22 }
 0x16b   :  { %v609_v27 = vadd.f32 %v593_v19, %v345_v13  ;;  %v594_v28 = vmax.f32 %v576_v21, 0.0  ;;  %v344_v29 = vmax.f32 %v320_v22, 0.0  ;;  %1018 = vmatmul.mubr.bf16.vlgmr.msra.gmra.mrb[16].mxu1 %v616_v8  ;;  %s1201_s23 = scalar_lea.vmem %s825_s22, 2048  ;;  %p1206_p13 = scmp.lt.s32.totalorder %s825_s22, %s825_s22 }
 0x16c   :  { %v607_v30 = vadd.f32 %v591_v24, %v343_v20  ;;  %v592_v31 = vmax.f32 %v568_v26, 0.0  ;;  %p1202_p12 = scmp.ne.s32.totalorder %s825_s22, %s1201_s23  ;;  %p1207_p0 = scmp.lt.s32.totalorder %s1201_s23, %s1201_s23 }
 0x16d   :  { %v610_v32 = vadd.f32 %v594_v28, %v346_v25 }
 0x16e   :  { %v608_v33 = vadd.f32 %v592_v31, %v344_v29  ;;  %p1208_p1 = por %p1207_p0, %p1206_p13 }
 0x16f   :  { %v618_v34 = vpack.c.bf16 %v610_v32, %v609_v27 }
 0x170   :  { %v617_v35 = vpack.c.bf16 %v608_v33, %v607_v30  ;;  %p1209_p2 = pnand %p1208_p1, %p1202_p12 }
 0x172   :  { %1021 = vmatprep.mubr.bf16.mxu1 %v617_v35 }
 0x173   :  { %1022 = vmatmul.mubr.bf16.gmra.mrb[20].mxu1 %v618_v34 }
 0x22e   :  { %v1011_v36 = vpop.f32.mrb[16].mxu0 }
 0x22f   :  { %v733_v37 = vadd.f32 %v1011_v36, %v872_v40  ;;  %v724_v41 = vpop.f32.mrb[17].mxu0 }
 0x230   :  { %v725_v38 = vadd.f32 %v872_v40, %v724_v41  ;;  %v1012_v39 = vpop.f32.mrb[18].mxu0 }
 0x231   :  { %v789_v42 = vmax.f32 %v733_v37, 0.0  ;;  %v736_v43 = vadd.f32 %v1012_v39, %v872_v40  ;;  %v727_v44 = vpop.f32.mrb[19].mxu0 }
 0x232   :  { %v787_v45 = vmax.f32 %v725_v38, 0.0  ;;  %v728_v46 = vadd.f32 %v872_v40, %v727_v44 }
 0x233   :  { %805 = vst [vmem:[#allocation11 + $0x10] sm:$0xff] %v789_v42  ;;  %v790_v47 = vmax.f32 %v736_v43, 0.0 }
 0x234   :  { %803 = vst [vmem:[#allocation11] sm:$0xff] %v787_v45  ;;  %v788_v48 = vmax.f32 %v728_v46, 0.0 }
 0x235   :  { %806 = vst [vmem:[#allocation11 + $0x18] sm:$0xff] %v790_v47 }
 0x236   :  { %804 = vst [vmem:[#allocation11 + $0x8] sm:$0xff] %v788_v48  ;;  %v1015_v49 = vpop.f32.mrb[20].mxu0 }
 0x237   :  { %v749_v50 = vadd.f32 %v1015_v49, %v872_v40  ;;  %v740_v51 = vpop.f32.mrb[21].mxu0 }
 0x238   :  { %v741_v52 = vadd.f32 %v872_v40, %v740_v51  ;;  %v1016_v53 = vpop.f32.mrb[22].mxu0 }
 0x239   :  { %v793_v54 = vmax.f32 %v749_v50, 0.0  ;;  %v752_v55 = vadd.f32 %v1016_v53, %v872_v40  ;;  %v743_v56 = vpop.f32.mrb[23].mxu0 }
 0x23a   :  { %v791_v57 = vmax.f32 %v741_v52, 0.0  ;;  %v744_v58 = vadd.f32 %v872_v40, %v743_v56 }
 0x23b   :  { %809 = vst [vmem:[#allocation11 + $0x30] sm:$0xff] %v793_v54  ;;  %v794_v59 = vmax.f32 %v752_v55, 0.0 }
 0x23c   :  { %807 = vst [vmem:[#allocation11 + $0x20] sm:$0xff] %v791_v57  ;;  %v792_v60 = vmax.f32 %v744_v58, 0.0 }
 0x23d   :  { %810 = vst [vmem:[#allocation11 + $0x38] sm:$0xff] %v794_v59 }
 0x23e   :  { %808 = vst [vmem:[#allocation11 + $0x28] sm:$0xff] %v792_v60  ;;  %v1019_v61 = vpop.f32.mrb[16].mxu1 }
 0x23f   :  { %v765_v62 = vadd.f32 %v1019_v61, %v872_v40  ;;  %v756_v63 = vpop.f32.mrb[17].mxu1 }
 0x240   :  { %v757_v0 = vadd.f32 %v872_v40, %v756_v63  ;;  %v1020_v1 = vpop.f32.mrb[18].mxu1 }
 0x241   :  { %v797_v2 = vmax.f32 %v765_v62, 0.0  ;;  %v768_v3 = vadd.f32 %v1020_v1, %v872_v40  ;;  %v759_v4 = vpop.f32.mrb[19].mxu1 }
 0x242   :  { %v795_v5 = vmax.f32 %v757_v0, 0.0  ;;  %v760_v6 = vadd.f32 %v872_v40, %v759_v4 }
 0x243   :  { %813 = vst [vmem:[#allocation11 + $0x50] sm:$0xff] %v797_v2  ;;  %v798_v7 = vmax.f32 %v768_v3, 0.0 }
 0x244   :  { %811 = vst [vmem:[#allocation11 + $0x40] sm:$0xff] %v795_v5  ;;  %v796_v8 = vmax.f32 %v760_v6, 0.0 }
 0x245   :  { %814 = vst [vmem:[#allocation11 + $0x58] sm:$0xff] %v798_v7 }
 0x246   :  { %812 = vst [vmem:[#allocation11 + $0x48] sm:$0xff] %v796_v8  ;;  %v1023_v9 = vpop.f32.mrb[20].mxu1 }
 0x247   :  { %v781_v10 = vadd.f32 %v1023_v9, %v872_v40  ;;  %v772_v11 = vpop.f32.mrb[21].mxu1 }
 0x248   :  { %v773_v12 = vadd.f32 %v872_v40, %v772_v11  ;;  %v1024_v13 = vpop.f32.mrb[22].mxu1 }
 0x249   :  { %v801_v14 = vmax.f32 %v781_v10, 0.0  ;;  %v784_v15 = vadd.f32 %v1024_v13, %v872_v40  ;;  %v775_v16 = vpop.f32.mrb[23].mxu1 }
 0x24a   :  { %v799_v17 = vmax.f32 %v773_v12, 0.0  ;;  %v776_v18 = vadd.f32 %v872_v40, %v775_v16 }
 0x24b   :  { %817 = vst [vmem:[#allocation11 + $0x70] sm:$0xff] %v801_v14  ;;  %v802_v19 = vmax.f32 %v784_v15, 0.0 }
 0x24c   :  { %815 = vst [vmem:[#allocation11 + $0x60] sm:$0xff] %v799_v17  ;;  %v800_v20 = vmax.f32 %v776_v18, 0.0 }
 0x24d   :  { %818 = vst [vmem:[#allocation11 + $0x78] sm:$0xff] %v802_v19 }
 0x24e   :  { %816 = vst [vmem:[#allocation11 + $0x68] sm:$0xff] %v800_v20 }
 0x24f   :  { %1212 = shalt.err (!%p1209_p2)
}
 0x250   :  { %s1213_s26 = scalar_lea.hbm %s1440_s8, 2048 }
 0x251   :  { %p1214_p3 = scmp.ne.s32.totalorder %s1440_s8, %s1213_s26  ;;  %p1217_p4 = scmp.lt.u32.totalorder %s1213_s26, %s1440_s8 }
 0x253   :  { %p1219_p5 = pnand %p1217_p4, %p1214_p3 }
 0x255   :  { %1222 = shalt.err (!%p1219_p5)
}
 0x256   :  { %s1239_s0 = smov 128   ;;  %s1240_s9 = smov 8  }
 0x257   :  { %830 = dma.vmem_to_hbm [thread:$0]  %s825_s22, 2048, %s1440_s8, [#allocation4], %s1239_s0, %s1239_s0, %s1240_s9  }
 0x258   :  { %1229 = dma.done.wait [#allocation4], 2048  }
 0x259   :  { %1230 = vsyncadd [#allocation4], 4294965248 }
 0x25a   :  { %834 = vsyncpa [#allocation3], 1 }
 0x25b   :  { %835 = vsyncpa [#allocation6], 1 }
 0x25c   :  { %836 = vsyncpa [#allocation9], 1 }
 0x25d   :  { %837 = vsyncpa [#allocation4], 1 }

</bundles_post_ra>
